<compile_context>
chip_gen: v7x
topology: tpu7x:2x2x1
jax: 0.10.0
libtpu: 0.0.40
codegen_flags: <defaults>
</compile_context>

<pallas_src>
from functools import partial

import numpy as np
import jax
import jax.numpy as jnp
from jax import lax
from jax.experimental import pallas as pl
from jax.experimental.pallas import tpu as pltpu


def _shifted_taps(x, mask_ref, H, W):
    """The 9 shifted-and-masked copies of x for a 3x3 conv, pad=1, stride=1.

    x        : (C, H*W) value, channels as rows, flattened spatial as lanes
    mask_ref : (9, H*W) 0/1 border masks, tap order k = dy*3 + dx
    Returns a list of 9 (C, H*W) values, tap order k = dy*3 + dx.
    """
    HW = H * W
    parts = []
    for k in range(9):
        dy, dx = k // 3, k % 3
        off = (dy - 1) * W + (dx - 1)          # flat source offset of this tap
        if off == 0:
            shifted = x
        else:
            # shifted[p] = x[(p + off) mod HW]; the wrap-around is killed by the mask.
            shifted = pltpu.roll(x, shift=(-off) % HW, axis=1)
        parts.append(shifted * mask_ref[k:k + 1, :])
    return parts


def basic_block_kernel(x_ref, w1_ref, w2_ref, bn_ref, mask_ref, o_ref, *, H, W):
    """One batch element per grid step.

    x_ref    : (Cin, H*W)      input slice (NCHW-flattened)
    w1_ref   : (Cout, 9*Cin)   conv1 weights, columns ordered (dy*3+dx)*Cin + cin
    w2_ref   : (Cout, 9*Cout)  conv2 weights, same column ordering
    bn_ref   : (Cout, 4)       folded BN params, columns = [s1, b1, s2, b2]
    mask_ref : (9, H*W)        0/1 border masks per tap
    o_ref    : (Cout, H*W)     output slice (NCHW-flattened)
    """

    def conv3x3(inp, w_ref):
        # im2col: (9*Cin, H*W), then a single K=9*Cin MXU matmul -> (Cout, H*W).
        col = jnp.concatenate(_shifted_taps(inp, mask_ref, H, W), axis=0)
        return jnp.dot(w_ref[...], col, preferred_element_type=jnp.float32)

    x = x_ref[...].astype(jnp.float32)        # loaded once; reused for the residual

    s1 = bn_ref[:, 0:1]
    b1 = bn_ref[:, 1:2]
    s2 = bn_ref[:, 2:3]
    b2 = bn_ref[:, 3:4]

    out1 = jnp.maximum(conv3x3(x, w1_ref) * s1 + b1, 0.0)    # conv1 + bn1 + relu
    out2 = conv3x3(out1, w2_ref) * s2 + b2                   # conv2 + bn2
    o_ref[...] = jnp.maximum(out2 + x, 0.0).astype(o_ref.dtype)  # + identity, relu


def _border_masks(H, W):
    """Host-side 0/1 masks: mask[k, p] = 1 iff output pixel p has an in-bounds
    source pixel for tap k of a 3x3 conv with padding 1."""
    yy, xx = np.meshgrid(np.arange(H), np.arange(W), indexing="ij")
    yy = yy.reshape(-1)
    xx = xx.reshape(-1)
    masks = np.zeros((9, H * W), np.float32)
    for k in range(9):
        dy, dx = k // 3, k % 3
        ys = yy + dy - 1
        xs = xx + dx - 1
        masks[k] = ((ys >= 0) & (ys < H) & (xs >= 0) & (xs < W)).astype(np.float32)
    return jnp.asarray(masks)


def basic_block_pallas(x_nchw, w1_oihw, w2_oihw, s1, b1, s2, b2):
    """x_nchw: (N, C, H, W) f32. Conv weights in PyTorch OIHW layout, bias=False.
    s*/b*: folded eval-mode BatchNorm scale/bias, shape (C,). Returns (N, C, H, W)."""
    N, C, H, W = x_nchw.shape
    Cout = w1_oihw.shape[0]
    assert C == Cout, "BasicBlock with downsample=None requires inplanes == planes"
    HW = H * W

    # Free, contiguous reshapes only (no transpose, no pad, no extra HBM passes).
    x_flat = x_nchw.reshape(N, C, HW)
    # (Cout, Cin, 3, 3) -> (Cout, 9*Cin), columns ordered (dy*3+dx)*Cin + cin.
    w1r = jnp.transpose(w1_oihw, (0, 2, 3, 1)).reshape(Cout, 9 * C)
    w2r = jnp.transpose(w2_oihw, (0, 2, 3, 1)).reshape(Cout, 9 * Cout)
    bn = jnp.stack([s1, b1, s2, b2], axis=1)          # (Cout, 4)
    masks = _border_masks(H, W)                       # (9, HW)

    kernel = partial(basic_block_kernel, H=H, W=W)
    out_flat = pl.pallas_call(
        kernel,
        out_shape=jax.ShapeDtypeStruct((N, Cout, HW), x_nchw.dtype),
        grid=(N,),
        in_specs=[
            pl.BlockSpec((None, C, HW), lambda n: (n, 0, 0)),
            pl.BlockSpec((Cout, 9 * C), lambda n: (0, 0)),
            pl.BlockSpec((Cout, 9 * Cout), lambda n: (0, 0)),
            pl.BlockSpec((Cout, 4), lambda n: (0, 0)),
            pl.BlockSpec((9, HW), lambda n: (0, 0)),
        ],
        out_specs=pl.BlockSpec((None, Cout, HW), lambda n: (n, 0, 0)),
        compiler_params=pltpu.CompilerParams(
            dimension_semantics=("parallel",)),
    )(x_flat, w1r, w2r, bn, masks)

    return out_flat.reshape(N, Cout, H, W)


def ref_forward(x, w1, w2, s1, b1, s2, b2):
    """Pure-JAX reference (lax.conv, NCHW/OIHW) for correctness checking."""
    dn = ("NCHW", "OIHW", "NCHW")
    y = lax.conv_general_dilated(x, w1, (1, 1), "SAME", dimension_numbers=dn)
    y = jnp.maximum(y * s1[None, :, None, None] + b1[None, :, None, None], 0.0)
    y = lax.conv_general_dilated(y, w2, (1, 1), "SAME", dimension_numbers=dn)
    y = y * s2[None, :, None, None] + b2[None, :, None, None]
    return jnp.maximum(y + x, 0.0)


if __name__ == "__main__":
    # Small shapes consistent with BasicBlock(inplanes=8, planes=8, stride=1).
    N, C, H, W = 2, 8, 16, 16
    eps = 1e-5

    key = jax.random.PRNGKey(0)
    kx, kw1, kw2, kg1, kb1, km1, kv1, kg2, kb2, km2, kv2 = jax.random.split(key, 11)

    x = jax.random.normal(kx, (N, C, H, W), jnp.float32)

    # PyTorch conv3x3 weights: (Cout, Cin, 3, 3), bias=False.
    w1 = 0.1 * jax.random.normal(kw1, (C, C, 3, 3), jnp.float32)
    w2 = 0.1 * jax.random.normal(kw2, (C, C, 3, 3), jnp.float32)

    # Eval-mode BatchNorm params folded to per-channel scale/bias.
    def fold_bn(kg, kb, km, kv):
        gamma = 1.0 + 0.1 * jax.random.normal(kg, (C,), jnp.float32)
        beta = 0.1 * jax.random.normal(kb, (C,), jnp.float32)
        mean = 0.1 * jax.random.normal(km, (C,), jnp.float32)
        var = jnp.abs(1.0 + 0.1 * jax.random.normal(kv, (C,), jnp.float32))
        scale = gamma / jnp.sqrt(var + eps)
        bias = beta - mean * scale
        return scale, bias

    s1, b1 = fold_bn(kg1, kb1, km1, kv1)
    s2, b2 = fold_bn(kg2, kb2, km2, kv2)

    out = basic_block_pallas(x, w1, w2, s1, b1, s2, b2)
    out = jax.block_until_ready(out)

    ref = ref_forward(x, w1, w2, s1, b1, s2, b2)
    assert out.shape == (N, C, H, W)
    assert jnp.allclose(out, ref, atol=2e-4, rtol=2e-4), "mismatch vs reference"

    print("KERNEL_OK")
</pallas_src>

<mosaic_0001>
module attributes {stable_mosaic.version = 11 : i64} {
  func.func @basic_block_kernel(%arg0: i32, %arg1: memref<1x8x256xf32, #tpu.memory_space<vmem>>, %arg2: memref<8x72xf32, #tpu.memory_space<vmem>>, %arg3: memref<8x72xf32, #tpu.memory_space<vmem>>, %arg4: memref<8x4xf32, #tpu.memory_space<vmem>>, %arg5: memref<9x256xf32, #tpu.memory_space<vmem>>, %arg6: memref<1x8x256xf32, #tpu.memory_space<vmem>>) attributes {dimension_semantics = [#tpu.dimension_semantics<parallel>], iteration_bounds = array<i64: 2>, scalar_prefetch = 0 : i64, scratch_operands = 0 : i64, tpu.core_type = #tpu.core_type<tc>, window_params = [{transform_indices = @transform_0, window_bounds = array<i64: 1, 8, 256>}, {pipeline_mode = #tpu.pipeline_mode<synchronous>, transform_indices = @transform_1, window_bounds = array<i64: 8, 72>}, {pipeline_mode = #tpu.pipeline_mode<synchronous>, transform_indices = @transform_2, window_bounds = array<i64: 8, 72>}, {pipeline_mode = #tpu.pipeline_mode<synchronous>, transform_indices = @transform_3, window_bounds = array<i64: 8, 4>}, {pipeline_mode = #tpu.pipeline_mode<synchronous>, transform_indices = @transform_4, window_bounds = array<i64: 9, 256>}, {transform_indices = @transform_5, window_bounds = array<i64: 1, 8, 256>}]} {
    %c0 = arith.constant 0 : index
    %c0_0 = arith.constant 0 : index
    %c0_1 = arith.constant 0 : index
    %0 = vector.load %arg1[%c0, %c0_0, %c0_1] : memref<1x8x256xf32, #tpu.memory_space<vmem>>, vector<1x8x256xf32>
    %1 = vector.shape_cast %0 : vector<1x8x256xf32> to vector<8x256xf32>
    %c0_2 = arith.constant 0 : index
    %c0_3 = arith.constant 0 : index
    %2 = vector.load %arg4[%c0_2, %c0_3] : memref<8x4xf32, #tpu.memory_space<vmem>>, vector<8x1xf32>
    %c0_4 = arith.constant 0 : index
    %c1 = arith.constant 1 : index
    %3 = vector.load %arg4[%c0_4, %c1] : memref<8x4xf32, #tpu.memory_space<vmem>>, vector<8x1xf32>
    %c0_5 = arith.constant 0 : index
    %c2 = arith.constant 2 : index
    %4 = vector.load %arg4[%c0_5, %c2] : memref<8x4xf32, #tpu.memory_space<vmem>>, vector<8x1xf32>
    %c0_6 = arith.constant 0 : index
    %c3 = arith.constant 3 : index
    %5 = vector.load %arg4[%c0_6, %c3] : memref<8x4xf32, #tpu.memory_space<vmem>>, vector<8x1xf32>
    %c17_i32 = arith.constant 17 : i32
    %6 = tpu.dynamic_rotate %1 by %c17_i32 dim 1 : vector<8x256xf32>, i32 -> vector<8x256xf32>
    %c0_7 = arith.constant 0 : index
    %c0_8 = arith.constant 0 : index
    %7 = vector.load %arg5[%c0_7, %c0_8] : memref<9x256xf32, #tpu.memory_space<vmem>>, vector<1x256xf32>
    %8 = vector.broadcast %7 : vector<1x256xf32> to vector<8x256xf32>
    %9 = arith.mulf %6, %8 : vector<8x256xf32>
    %c16_i32 = arith.constant 16 : i32
    %10 = tpu.dynamic_rotate %1 by %c16_i32 dim 1 : vector<8x256xf32>, i32 -> vector<8x256xf32>
    %c1_9 = arith.constant 1 : index
    %c0_10 = arith.constant 0 : index
    %11 = vector.load %arg5[%c1_9, %c0_10] : memref<9x256xf32, #tpu.memory_space<vmem>>, vector<1x256xf32>
    %12 = vector.broadcast %11 : vector<1x256xf32> to vector<8x256xf32>
    %13 = arith.mulf %10, %12 : vector<8x256xf32>
    %c15_i32 = arith.constant 15 : i32
    %14 = tpu.dynamic_rotate %1 by %c15_i32 dim 1 : vector<8x256xf32>, i32 -> vector<8x256xf32>
    %c2_11 = arith.constant 2 : index
    %c0_12 = arith.constant 0 : index
    %15 = vector.load %arg5[%c2_11, %c0_12] : memref<9x256xf32, #tpu.memory_space<vmem>>, vector<1x256xf32>
    %16 = vector.broadcast %15 : vector<1x256xf32> to vector<8x256xf32>
    %17 = arith.mulf %14, %16 : vector<8x256xf32>
    %c1_i32 = arith.constant 1 : i32
    %18 = tpu.dynamic_rotate %1 by %c1_i32 dim 1 : vector<8x256xf32>, i32 -> vector<8x256xf32>
    %c3_13 = arith.constant 3 : index
    %c0_14 = arith.constant 0 : index
    %19 = vector.load %arg5[%c3_13, %c0_14] : memref<9x256xf32, #tpu.memory_space<vmem>>, vector<1x256xf32>
    %20 = vector.broadcast %19 : vector<1x256xf32> to vector<8x256xf32>
    %21 = arith.mulf %18, %20 : vector<8x256xf32>
    %c4 = arith.constant 4 : index
    %c0_15 = arith.constant 0 : index
    %22 = vector.load %arg5[%c4, %c0_15] : memref<9x256xf32, #tpu.memory_space<vmem>>, vector<1x256xf32>
    %23 = vector.broadcast %22 : vector<1x256xf32> to vector<8x256xf32>
    %24 = arith.mulf %1, %23 : vector<8x256xf32>
    %c255_i32 = arith.constant 255 : i32
    %25 = tpu.dynamic_rotate %1 by %c255_i32 dim 1 : vector<8x256xf32>, i32 -> vector<8x256xf32>
    %c5 = arith.constant 5 : index
    %c0_16 = arith.constant 0 : index
    %26 = vector.load %arg5[%c5, %c0_16] : memref<9x256xf32, #tpu.memory_space<vmem>>, vector<1x256xf32>
    %27 = vector.broadcast %26 : vector<1x256xf32> to vector<8x256xf32>
    %28 = arith.mulf %25, %27 : vector<8x256xf32>
    %c241_i32 = arith.constant 241 : i32
    %29 = tpu.dynamic_rotate %1 by %c241_i32 dim 1 : vector<8x256xf32>, i32 -> vector<8x256xf32>
    %c6 = arith.constant 6 : index
    %c0_17 = arith.constant 0 : index
    %30 = vector.load %arg5[%c6, %c0_17] : memref<9x256xf32, #tpu.memory_space<vmem>>, vector<1x256xf32>
    %31 = vector.broadcast %30 : vector<1x256xf32> to vector<8x256xf32>
    %32 = arith.mulf %29, %31 : vector<8x256xf32>
    %c240_i32 = arith.constant 240 : i32
    %33 = tpu.dynamic_rotate %1 by %c240_i32 dim 1 : vector<8x256xf32>, i32 -> vector<8x256xf32>
    %c7 = arith.constant 7 : index
    %c0_18 = arith.constant 0 : index
    %34 = vector.load %arg5[%c7, %c0_18] : memref<9x256xf32, #tpu.memory_space<vmem>>, vector<1x256xf32>
    %35 = vector.broadcast %34 : vector<1x256xf32> to vector<8x256xf32>
    %36 = arith.mulf %33, %35 : vector<8x256xf32>
    %c239_i32 = arith.constant 239 : i32
    %37 = tpu.dynamic_rotate %1 by %c239_i32 dim 1 : vector<8x256xf32>, i32 -> vector<8x256xf32>
    %c8 = arith.constant 8 : index
    %c0_19 = arith.constant 0 : index
    %38 = vector.load %arg5[%c8, %c0_19] : memref<9x256xf32, #tpu.memory_space<vmem>>, vector<1x256xf32>
    %39 = vector.broadcast %38 : vector<1x256xf32> to vector<8x256xf32>
    %40 = arith.mulf %37, %39 : vector<8x256xf32>
    %41 = tpu.concatenate %9, %13, %17, %21, %24, %28, %32, %36, %40 in 0 : vector<8x256xf32>, vector<8x256xf32>, vector<8x256xf32>, vector<8x256xf32>, vector<8x256xf32>, vector<8x256xf32>, vector<8x256xf32>, vector<8x256xf32>, vector<8x256xf32> -> vector<72x256xf32>
    %c0_20 = arith.constant 0 : index
    %c0_21 = arith.constant 0 : index
    %42 = vector.load %arg2[%c0_20, %c0_21] : memref<8x72xf32, #tpu.memory_space<vmem>>, vector<8x72xf32>
    %cst = arith.constant dense<0.000000e+00> : vector<8x256xf32>
    %43 = tpu.matmul %42, %41, %cst {dimension_numbers = #tpu.dot_dimension_numbers<[1], [0], [0], [1], [0, 0, 1, 1], [], []>} : vector<8x72xf32>, vector<72x256xf32>, vector<8x256xf32> -> vector<8x256xf32>
    %44 = vector.broadcast %2 : vector<8x1xf32> to vector<8x256xf32>
    %45 = arith.mulf %43, %44 : vector<8x256xf32>
    %46 = vector.broadcast %3 : vector<8x1xf32> to vector<8x256xf32>
    %47 = arith.addf %45, %46 : vector<8x256xf32>
    %cst_22 = arith.constant 0.000000e+00 : f32
    %48 = vector.broadcast %cst_22 : f32 to vector<8x256xf32>
    %49 = arith.maximumf %47, %48 : vector<8x256xf32>
    %c17_i32_23 = arith.constant 17 : i32
    %50 = tpu.dynamic_rotate %49 by %c17_i32_23 dim 1 : vector<8x256xf32>, i32 -> vector<8x256xf32>
    %c0_24 = arith.constant 0 : index
    %c0_25 = arith.constant 0 : index
    %51 = vector.load %arg5[%c0_24, %c0_25] : memref<9x256xf32, #tpu.memory_space<vmem>>, vector<1x256xf32>
    %52 = vector.broadcast %51 : vector<1x256xf32> to vector<8x256xf32>
    %53 = arith.mulf %50, %52 : vector<8x256xf32>
    %c16_i32_26 = arith.constant 16 : i32
    %54 = tpu.dynamic_rotate %49 by %c16_i32_26 dim 1 : vector<8x256xf32>, i32 -> vector<8x256xf32>
    %c1_27 = arith.constant 1 : index
    %c0_28 = arith.constant 0 : index
    %55 = vector.load %arg5[%c1_27, %c0_28] : memref<9x256xf32, #tpu.memory_space<vmem>>, vector<1x256xf32>
    %56 = vector.broadcast %55 : vector<1x256xf32> to vector<8x256xf32>
    %57 = arith.mulf %54, %56 : vector<8x256xf32>
    %c15_i32_29 = arith.constant 15 : i32
    %58 = tpu.dynamic_rotate %49 by %c15_i32_29 dim 1 : vector<8x256xf32>, i32 -> vector<8x256xf32>
    %c2_30 = arith.constant 2 : index
    %c0_31 = arith.constant 0 : index
    %59 = vector.load %arg5[%c2_30, %c0_31] : memref<9x256xf32, #tpu.memory_space<vmem>>, vector<1x256xf32>
    %60 = vector.broadcast %59 : vector<1x256xf32> to vector<8x256xf32>
    %61 = arith.mulf %58, %60 : vector<8x256xf32>
    %c1_i32_32 = arith.constant 1 : i32
    %62 = tpu.dynamic_rotate %49 by %c1_i32_32 dim 1 : vector<8x256xf32>, i32 -> vector<8x256xf32>
    %c3_33 = arith.constant 3 : index
    %c0_34 = arith.constant 0 : index
    %63 = vector.load %arg5[%c3_33, %c0_34] : memref<9x256xf32, #tpu.memory_space<vmem>>, vector<1x256xf32>
    %64 = vector.broadcast %63 : vector<1x256xf32> to vector<8x256xf32>
    %65 = arith.mulf %62, %64 : vector<8x256xf32>
    %c4_35 = arith.constant 4 : index
    %c0_36 = arith.constant 0 : index
    %66 = vector.load %arg5[%c4_35, %c0_36] : memref<9x256xf32, #tpu.memory_space<vmem>>, vector<1x256xf32>
    %67 = vector.broadcast %66 : vector<1x256xf32> to vector<8x256xf32>
    %68 = arith.mulf %49, %67 : vector<8x256xf32>
    %c255_i32_37 = arith.constant 255 : i32
    %69 = tpu.dynamic_rotate %49 by %c255_i32_37 dim 1 : vector<8x256xf32>, i32 -> vector<8x256xf32>
    %c5_38 = arith.constant 5 : index
    %c0_39 = arith.constant 0 : index
    %70 = vector.load %arg5[%c5_38, %c0_39] : memref<9x256xf32, #tpu.memory_space<vmem>>, vector<1x256xf32>
    %71 = vector.broadcast %70 : vector<1x256xf32> to vector<8x256xf32>
    %72 = arith.mulf %69, %71 : vector<8x256xf32>
    %c241_i32_40 = arith.constant 241 : i32
    %73 = tpu.dynamic_rotate %49 by %c241_i32_40 dim 1 : vector<8x256xf32>, i32 -> vector<8x256xf32>
    %c6_41 = arith.constant 6 : index
    %c0_42 = arith.constant 0 : index
    %74 = vector.load %arg5[%c6_41, %c0_42] : memref<9x256xf32, #tpu.memory_space<vmem>>, vector<1x256xf32>
    %75 = vector.broadcast %74 : vector<1x256xf32> to vector<8x256xf32>
    %76 = arith.mulf %73, %75 : vector<8x256xf32>
    %c240_i32_43 = arith.constant 240 : i32
    %77 = tpu.dynamic_rotate %49 by %c240_i32_43 dim 1 : vector<8x256xf32>, i32 -> vector<8x256xf32>
    %c7_44 = arith.constant 7 : index
    %c0_45 = arith.constant 0 : index
    %78 = vector.load %arg5[%c7_44, %c0_45] : memref<9x256xf32, #tpu.memory_space<vmem>>, vector<1x256xf32>
    %79 = vector.broadcast %78 : vector<1x256xf32> to vector<8x256xf32>
    %80 = arith.mulf %77, %79 : vector<8x256xf32>
    %c239_i32_46 = arith.constant 239 : i32
    %81 = tpu.dynamic_rotate %49 by %c239_i32_46 dim 1 : vector<8x256xf32>, i32 -> vector<8x256xf32>
    %c8_47 = arith.constant 8 : index
    %c0_48 = arith.constant 0 : index
    %82 = vector.load %arg5[%c8_47, %c0_48] : memref<9x256xf32, #tpu.memory_space<vmem>>, vector<1x256xf32>
    %83 = vector.broadcast %82 : vector<1x256xf32> to vector<8x256xf32>
    %84 = arith.mulf %81, %83 : vector<8x256xf32>
    %85 = tpu.concatenate %53, %57, %61, %65, %68, %72, %76, %80, %84 in 0 : vector<8x256xf32>, vector<8x256xf32>, vector<8x256xf32>, vector<8x256xf32>, vector<8x256xf32>, vector<8x256xf32>, vector<8x256xf32>, vector<8x256xf32>, vector<8x256xf32> -> vector<72x256xf32>
    %c0_49 = arith.constant 0 : index
    %c0_50 = arith.constant 0 : index
    %86 = vector.load %arg3[%c0_49, %c0_50] : memref<8x72xf32, #tpu.memory_space<vmem>>, vector<8x72xf32>
    %cst_51 = arith.constant dense<0.000000e+00> : vector<8x256xf32>
    %87 = tpu.matmul %86, %85, %cst_51 {dimension_numbers = #tpu.dot_dimension_numbers<[1], [0], [0], [1], [0, 0, 1, 1], [], []>} : vector<8x72xf32>, vector<72x256xf32>, vector<8x256xf32> -> vector<8x256xf32>
    %88 = vector.broadcast %4 : vector<8x1xf32> to vector<8x256xf32>
    %89 = arith.mulf %87, %88 : vector<8x256xf32>
    %90 = vector.broadcast %5 : vector<8x1xf32> to vector<8x256xf32>
    %91 = arith.addf %89, %90 : vector<8x256xf32>
    %92 = arith.addf %91, %1 : vector<8x256xf32>
    %cst_52 = arith.constant 0.000000e+00 : f32
    %93 = vector.broadcast %cst_52 : f32 to vector<8x256xf32>
    %94 = arith.maximumf %92, %93 : vector<8x256xf32>
    %c0_53 = arith.constant 0 : index
    %c0_54 = arith.constant 0 : index
    %c0_55 = arith.constant 0 : index
    %95 = vector.load %arg6[%c0_53, %c0_54, %c0_55] : memref<1x8x256xf32, #tpu.memory_space<vmem>>, vector<1x8x256xf32>
    %96 = vector.shape_cast %95 : vector<1x8x256xf32> to vector<8x256xf32>
    %97 = vector.shape_cast %94 : vector<8x256xf32> to vector<1x8x256xf32>
    tpu.vector_store %arg6[%c0_53, %c0_54, %c0_55], %97 {strides = array<i32>} : memref<1x8x256xf32, #tpu.memory_space<vmem>>, vector<1x8x256xf32>,
    return
  }
  func.func @transform_0(%arg0: i32) -> (i32, i32, i32) {
    %c0_i32 = arith.constant 0 : i32
    %c0_i32_0 = arith.constant 0 : i32
    %c0_i32_1 = arith.constant 0 : i32
    return %arg0, %c0_i32, %c0_i32_0 : i32, i32, i32
  }
  func.func @transform_1(%arg0: i32) -> (i32, i32) {
    %c0_i32 = arith.constant 0 : i32
    %c0_i32_0 = arith.constant 0 : i32
    %c0_i32_1 = arith.constant 0 : i32
    return %c0_i32, %c0_i32_0 : i32, i32
  }
  func.func @transform_2(%arg0: i32) -> (i32, i32) {
    %c0_i32 = arith.constant 0 : i32
    %c0_i32_0 = arith.constant 0 : i32
    %c0_i32_1 = arith.constant 0 : i32
    return %c0_i32, %c0_i32_0 : i32, i32
  }
  func.func @transform_3(%arg0: i32) -> (i32, i32) {
    %c0_i32 = arith.constant 0 : i32
    %c0_i32_0 = arith.constant 0 : i32
    %c0_i32_1 = arith.constant 0 : i32
    return %c0_i32, %c0_i32_0 : i32, i32
  }
  func.func @transform_4(%arg0: i32) -> (i32, i32) {
    %c0_i32 = arith.constant 0 : i32
    %c0_i32_0 = arith.constant 0 : i32
    %c0_i32_1 = arith.constant 0 : i32
    return %c0_i32, %c0_i32_0 : i32, i32
  }
  func.func @transform_5(%arg0: i32) -> (i32, i32, i32) {
    %c0_i32 = arith.constant 0 : i32
    %c0_i32_0 = arith.constant 0 : i32
    %c0_i32_1 = arith.constant 0 : i32
    return %arg0, %c0_i32, %c0_i32_0 : i32, i32, i32
  }
}

</mosaic_0001>

<bundles_post_ra>
// kernel: tpu_custom_call.1
= control target key start
LH: loop header
LB: loop body
LE: loop exit
PB: predicated region body
PF: predicated region fallthrough
CT: control target
= control target key end

     0   :  { %10 = vsyncpa [#allocation3], 0  ;;  %s1543_s0 = inlined_call_operand.hbm [shape: f32[2,8,256], index: 0, kind: input, shape index: {}]   ;;  %s1544_s1 = inlined_call_operand.vmem [shape: f32[8,72], index: 1, kind: input, shape index: {}]   ;;  %s1545_s2 = inlined_call_operand.vmem [shape: f32[8,72], index: 2, kind: input, shape index: {}]   ;;  %s1546_s3 = inlined_call_operand.vmem [shape: f32[8,4], index: 3, kind: input, shape index: {}]   ;;  %s1547_s4 = inlined_call_operand.hbm [shape: f32[9,256], index: 4, kind: input, shape index: {}]   ;;  %s1548_s5 = inlined_call_operand.hbm [shape: f32[2,8,256], index: 5, kind: output, shape index: {}]  }
   0x1   :  { %12 = vsyncpa [#allocation3 + $0x1], 0 }
   0x2   :  { %13 = vsyncpa [#allocation6], 0 }
   0x3   :  { %14 = vsyncpa [#allocation4], 0 }
   0x4   :  { %16 = vsyncpa [#allocation4 + $0x1], 0  ;;  %s1102_s18 = smov 0   ;;  %s1104_s19 = smov 0  }
   0x5   :  { %s1106_s20 = smov 0   ;;  %s1108_s21 = smov 0  }
   0x6 LB: > { %s1123_s22 = sadd.s32 4294967295, %s1052_s21   ;;  %s796_s23 = sadd.s32 4294967294, %s1052_s21   ;;  %s1052_s21 = sphi %s1108_s21, %s1568_s21   ;;  %s1048_s20 = sphi %s1106_s20, %s1567_s20   ;;  %s1044_s19 = sphi %s1104_s19, %s1566_s19   ;;  %s1040_s18 = sphi %s1102_s18, %s1565_s18  }
   0x7   : > { %p42_p0 = scmp.ne.s32.totalorder %s1044_s19, %s1040_s18  ;;  %p1549_p1 = scmp.eq.s32.totalorder %s1123_s22, 0 }
   0x8   : > { %p156_p3 = scmp.eq.s32.totalorder %s796_s23, 1  ;;  %p797_p5 = scmp.ge.s32.totalorder %s1052_s21, 1 }
   0x9   : > { %p1132_p4 = por %p1549_p1, %p42_p0  ;;  %p163_p7 = scmp.lt.s32.totalorder %s1052_s21, 3 }
   0xa   : > { %p1137_p6 = por %p156_p3, %p42_p0  ;;  %s1054_s27 = smov [#allocation5]  }
   0xb   : > { %s1552_s24 = scalar_select %p1132_p4, 1, 0 }
   0xc   : > { %s1553_s25 = scalar_select %p1137_p6, 1, 0 }
   0xd   : > { %p1142_p8 = pnand %p797_p5, %p163_p7  ;;  %s184_s28 = sshll.u32 %s1054_s27, 4  ;;  %s1146_s28 = int_to_ptr.vmem [resolvable:$true] %s184_s28 }
   0xe   : > { %s1158_s30 = sadd.s32 1, %s1052_s21   ;;  %s29_s6 = sadd.s32 1, %s1048_s20 }
   0xf   : > { %s1554_s26 = scalar_select %p1142_p8, 1, 0 }
  0x10   : > { %p856_p9 = pneg %p1142_p8  ;;  %s26_s7 = ssub.s32 %s1052_s21, %s1158_s30 }
  0x11   : > { %s924_s10 = scalar_lea.hbm %s1547_s4, 512 }
  0x12   : > { %p1153_p11 = pnand %p856_p9, %p1549_p1  ;;  %p925_p12 = scmp.ne.s32.totalorder %s1547_s4, %s924_s10 }
  0x13   : > { %p931_p5 = scmp.lt.u32.totalorder %s924_s10, %s1547_s4 }
  0x14   : > { %p926_p13 = pneg %p1153_p11 }
  0x16   : > { %p927_p0 = pnand %p926_p13, %p925_p12 }
  0x18   : > { %p928_p3 = pneg %p927_p0 }
  0x1a   : > { %p933_p7 = pnand %p931_p5, %p928_p3 }
  0x1c   : > { %936 = shalt.err (!%p933_p7)
}
  0x1d   : > { %s937_s15 = scalar_lea.vmem %s1146_s28, 512  ;;  %p945_p2 = scmp.lt.s32.totalorder %s1146_s28, %s1146_s28 }
  0x1e   : > { %p938_p9 = scmp.ne.s32.totalorder %s1146_s28, %s937_s15  ;;  %p946_p6 = scmp.lt.s32.totalorder %s937_s15, %s937_s15 }
  0x20   : > { %p940_p10 = pnand %p938_p9, %p926_p13  ;;  %p947_p4 = por %p946_p6, %p945_p2 }
  0x22   : > { %p941_p1 = pneg %p940_p10 }
  0x24   : > { %p948_p8 = pnand %p947_p4, %p941_p1 }
  0x26   : > { %951 = shalt.err (!%p948_p8)
}
  0x27   : > { %s1055_s16 = smov 256   ;;  %s1056_s17 = smov 16  }
  0x28   : > { %859 = dma.hbm_to_vmem [thread:$0]  (!%p1153_p11), %s1547_s4, 512, %s1146_s28, [#allocation6], %s1055_s16, %s1055_s16, %s1056_s17  }
  0x29   : > { %p27_p2 = scmp.eq.s32.totalorder %s26_s7, 0  ;;  %p36_p1 = scmp.ne.s32.totalorder %s1048_s20, %s1044_s19 }
  0x2a   : > { %p37_p4 = scmp.eq.s32.totalorder %s1052_s21, 0  ;;  %p869_p6 = scmp.lt.s32.totalorder %s1052_s21, 2 }
  0x2b   : > { %s1189_s8 = scalar_select %p27_p2, %s1048_s20, %s29_s6  }
  0x2c   : > { %p38_p8 = por %p37_p4, %p36_p1  ;;  %p1556_p10 = scmp.eq.s32.totalorder %s1123_s22, 1 }
  0x2d   : > { %s198_s10 = sand.u32 1, %s1048_s20   ;;  %s814_s11 = sshll.u32 %s1052_s21, 8 }
  0x2e   : > { %p1193_p12 = por %p1556_p10, %p36_p1  ;;  %s800_s12 = sshll.u32 %s198_s10, 4 }
  0x2f   : > { %s1202_s14 = scalar_lea.hbm %s1543_s0, %s814_s11  ;;  %s202_s28 = scalar_lea.vmem [#allocation2], %s800_s12 }
  0x30   : > { %s210_s6 = sshll.u32 %s202_s28, 4  ;;  %p1204_p11 = pnand %p869_p6, %p38_p8  ;;  %s1208_s6 = int_to_ptr.vmem [resolvable:$true] %s210_s6 }
  0x31   : > { %s199_s15 = scalar_lea.sflag [#allocation3], %s198_s10  ;;  %s952_s16 = scalar_lea.hbm %s1202_s14, 256 }
  0x32   : > { %p953_p13 = scmp.ne.s32.totalorder %s1202_s14, %s952_s16  ;;  %p954_p0 = pneg %p1204_p11 }
  0x33   : > { %s957_s27 = scalar_lea.hbm %s1543_s0, 512  ;;  %p958_p7 = scmp.lt.u32.totalorder %s1202_s14, %s1543_s0 }
  0x34   : > { %p955_p3 = pnand %p954_p0, %p953_p13  ;;  %p959_p9 = scmp.lt.u32.totalorder %s957_s27, %s952_s16 }
  0x35   : > { %p961_p1 = scmp.lt.u32.totalorder %s952_s16, %s1202_s14 }
  0x36   : > { %p956_p5 = pneg %p955_p3  ;;  %p960_p2 = por %p959_p9, %p958_p7 }
  0x38   : > { %p962_p4 = por %p961_p1, %p960_p2 }
  0x3a   : > { %p963_p6 = pnand %p962_p4, %p956_p5 }
  0x3c   : > { %966 = shalt.err (!%p963_p6)
}
  0x3d   : > { %s967_s10 = scalar_lea.vmem %s1208_s6, 256  ;;  %s1057_s29 = smov [#allocation2]  }
  0x3e   : > { %p968_p8 = scmp.ne.s32.totalorder %s1208_s6, %s967_s10  ;;  %s972_s13 = sshll.u32 %s1057_s29, 4  ;;  %s973_s13 = int_to_ptr.vmem [resolvable:$false] %s972_s13 }
  0x3f   : > { %s974_s28 = scalar_lea.vmem %s973_s13, 512  ;;  %p975_p3 = scmp.lt.s32.totalorder %s1208_s6, %s973_s13 }
  0x40   : > { %p970_p10 = pnand %p968_p8, %p954_p0  ;;  %p976_p7 = scmp.lt.s32.totalorder %s974_s28, %s967_s10 }
  0x42   : > { %p971_p13 = pneg %p970_p10  ;;  %p977_p9 = por %p976_p7, %p975_p3 }
  0x44   : > { %p978_p2 = pnand %p977_p9, %p971_p13 }
  0x46   : > { %981 = shalt.err (!%p978_p2)
}
  0x47   : > { %863 = dma.hbm_to_vmem [thread:$0]  (!%p1204_p11), %s1202_s14, 256, %s1208_s6, %s199_s15  }
  0x48   : > { %p1559_p5 = scmp.ne.s32.totalorder %s1554_s26, 0 }
  0x49   : > { %s1238_s16 = sand.u32 (!%p1559_p5), 1, %s1044_s19   ;;  %p1560_p0 = scmp.ne.s32.totalorder (!%p1559_p5), %s1552_s24, 0 }
  0x4a   : > { %219 = sbr.rel (%p1559_p5) target bundleno = 840 (0x348), region = 40  ;;  %s804_s17 = sshll.u32 (!%p1559_p5), %s1238_s16, 4 }
  0x4b   : > { %s222_s23 = scalar_lea.sflag (!%p1559_p5), [#allocation3], %s1238_s16  ;;  %s225_s27 = scalar_lea.vmem (!%p1559_p5), [#allocation2], %s804_s17 }
  0x51   : > { %1027 = dma.done.wait (%p1560_p0), %s222_s23, 256  }
  0x52   : > { %1029 = vsyncadd (%p1560_p0), %s222_s23, 4294967040  ;;  %p1561_p11 = scmp.eq.s32.totalorder %s1123_s22, 0 }
  0x54   : > { %1031 = dma.done.wait (%p1561_p11), [#allocation6], 512   ;;  %p1562_p1 = pmov %p1561_p11 }
  0x55   : > { %v1252_v0 = vld [vmem:[%s225_s27] sm:$0xff]  ;;  %s1058_s26 = smov 16   ;;  %s1059_s14 = smov 17   ;;  %v1258_v1 = vld [vmem:[%s225_s27 + $0x8] sm:$0xff]  ;;  %v1064_v2 = vmov 0.0   ;;  %v1065_v3 = vmov 0   ;;  %v263_v6 = vlaneseq }
  0x56   : > { %1033 = vsyncadd (%p1562_p1), [#allocation6], 4294966784  ;;  %282 = vrot.lane.b32.xlu1 %v1252_v0, %s1058_s26  ;;  %259 = vrot.lane.b32.xlu0 %v1252_v0, %s1059_s14  ;;  %s1060_s24 = smov 15   ;;  %s1061_s6 = smov 1   ;;  %v1066_v4 = vmov 1   ;;  %v1291_v5 = vld [vmem:[%s1546_s3] sm:$0xff] }
  0x57   : > { %s1062_s7 = smov 127   ;;  %s1063_s15 = smov 113   ;;  %520 = vmatprep.mubr.f32.mxu0 %v1064_v2  ;;  %676 = vmatprep.mubr.f32.mxu1 %v1064_v2  ;;  %v271_v7 = vshrl.u32 %v263_v6, 7  ;;  %v1295_v8 = vand.u32 127, %v263_v6  ;;  %vm452_vm8 = vcmask 588800  }
  0x58   : > { %920 = vset.pattern.permute.xlu0 %v1065_v3  ;;  %921 = vset.pattern.permute.xlu1 %v1066_v4  ;;  %s1067_s11 = smov 112   ;;  %s1068_s12 = smov 111   ;;  %v290_v11 = vld [vmem:[#allocation5 + $0x1] ss:$8 sm:$0x3] }
  0x59   : > { %v1297_v9 = vsub.s32 0, %v271_v7  ;;  %v1299_v10 = vsub.s32 1, %v271_v7  ;;  %v268_v12 = vld [vmem:[#allocation5] ss:$8 sm:$0x3]  ;;  %vm286_vm0 = vcmp.lt.s32.totalorder %v1295_v8, 16 }
  0x5a   : > { %284 = vrot.lane.b32.xlu1 %v1258_v1, %s1058_s26  ;;  %261 = vrot.lane.b32.xlu0 %v1258_v1, %s1059_s14  ;;  %vm265_vm1 = vcmp.lt.s32.totalorder %v1295_v8, 17  ;;  %v312_v29 = vld [vmem:[#allocation5 + $0x2] ss:$8 sm:$0x3]  ;;  %vm308_vm2 = vcmp.lt.s32.totalorder %v1295_v8, 15  ;;  %vm330_vm3 = vcmp.lt.s32.totalorder %v1295_v8, 1 }
  0x5b   : > { %v1304_v15 = vrot.slane %v290_v11, %v1297_v9  ;;  %v1307_v16 = vrot.slane %v268_v12, %v1297_v9  ;;  %v1310_v17 = vrot.slane %v268_v12, %v1299_v10  ;;  %v1313_v18 = vrot.slane %v290_v11, %v1299_v10  ;;  %v334_v30 = vld [vmem:[#allocation5 + $0x3] ss:$8 sm:$0x3]  ;;  %v349_v35 = vld [vmem:[#allocation5 + $0x4] ss:$8 sm:$0x3] }
  0x5c   : > { %v1330_v36 = vrot.slane %v312_v29, %v1297_v9  ;;  %v1333_v37 = vrot.slane %v312_v29, %v1299_v10  ;;  %v1336_v38 = vrot.slane %v334_v30, %v1297_v9  ;;  %v1339_v39 = vrot.slane %v334_v30, %v1299_v10  ;;  %v371_v40 = vld [vmem:[#allocation5 + $0x5] ss:$8 sm:$0x3]  ;;  %v393_v3 = vld [vmem:[#allocation5 + $0x6] ss:$8 sm:$0x3] }
  0x5d   : > { %vm367_vm4 = vcmp.lt.s32.totalorder %v1295_v8, 127  ;;  %v1347_v45 = vrot.slane %v349_v35, %v1299_v10  ;;  %v1350_v46 = vrot.slane %v349_v35, %v1297_v9  ;;  %v1357_v49 = vrot.slane %v371_v40, %v1297_v9  ;;  %v415_v4 = vld [vmem:[#allocation5 + $0x7] ss:$8 sm:$0x3] }
  0x5e   : > { %306 = vrot.lane.b32.xlu1 %v1258_v1, %s1060_s24  ;;  %304 = vrot.lane.b32.xlu0 %v1252_v0, %s1060_s24  ;;  %v1360_v50 = vrot.slane %v371_v40, %v1299_v10  ;;  %vm389_vm5 = vcmp.lt.s32.totalorder %v1295_v8, 113  ;;  %vm411_vm6 = vcmp.lt.s32.totalorder %v1295_v8, 112  ;;  %vm433_vm7 = vcmp.lt.s32.totalorder %v1295_v8, 111 }
  0x5f   : > { %v362_v59 = vmul.f32 %v1347_v45, %v1258_v1  ;;  %v361_v60 = vmul.f32 %v1350_v46, %v1252_v0 }
  0x62   : > { %328 = vrot.lane.b32.xlu1 %v1258_v1, %s1061_s6  ;;  %326 = vrot.lane.b32.xlu0 %v1252_v0, %s1061_s6 }
  0x66   : > { %365 = vrot.lane.b32.xlu1 %v1258_v1, %s1062_s7  ;;  %363 = vrot.lane.b32.xlu0 %v1252_v0, %s1062_s7 }
  0x6a   : > { %387 = vrot.lane.b32.xlu1 %v1258_v1, %s1063_s15  ;;  %385 = vrot.lane.b32.xlu0 %v1252_v0, %s1063_s15 }
  0x6e   : > { %409 = vrot.lane.b32.xlu1 %v1258_v1, %s1067_s11  ;;  %407 = vrot.lane.b32.xlu0 %v1252_v0, %s1067_s11 }
  0x72   : > { %431 = vrot.lane.b32.xlu1 %v1258_v1, %s1068_s12  ;;  %429 = vrot.lane.b32.xlu0 %v1252_v0, %s1068_s12 }
  0x76   : > { %529 = vperm.xlu0 %920, %v1291_v5   ;;  %535 = vperm.xlu1 %921, %v1291_v5  }
  0xc8   : > { %v283_v13 = vpop.permute.xlu1 %282  ;;  %v260_v14 = vpop.permute.xlu0 %259 }
  0xcc   : > { %v285_v19 = vpop.permute.xlu1 %284  ;;  %v262_v20 = vpop.permute.xlu0 %261 }
  0xcd   : > { %v287_v21 = vsel %vm286_vm0, %v283_v13, %v285_v19  ;;  %v288_v22 = vsel %vm286_vm0, %v285_v19, %v283_v13  ;;  %v266_v23 = vsel %vm265_vm1, %v260_v14, %v262_v20  ;;  %v267_v24 = vsel %vm265_vm1, %v262_v20, %v260_v14 }
  0xce   : > { %v302_v25 = vmul.f32 %v1304_v15, %v288_v22  ;;  %v280_v26 = vmul.f32 %v1307_v16, %v267_v24  ;;  %v281_v27 = vmul.f32 %v1310_v17, %v266_v23  ;;  %v303_v28 = vmul.f32 %v1313_v18, %v287_v21  ;;  %v437_v21 = vld [vmem:[#allocation5 + $0x10] ss:$8 sm:$0x3] }
  0xcf   : > { %v1378_v13 = vrot.slane %v393_v3, %v1297_v9  ;;  %v1381_v14 = vrot.slane %v393_v3, %v1299_v10  ;;  %v1385_v19 = vrot.slane %v415_v4, %v1297_v9  ;;  %v1388_v20 = vrot.slane %v415_v4, %v1299_v10 }
  0xd0   : > { %v307_v31 = vpop.permute.xlu1 %306  ;;  %v305_v32 = vpop.permute.xlu0 %304  ;;  %v816_v33 = vpack.c.bf16 %v303_v28, %v281_v27  ;;  %v818_v34 = vpack.c.bf16 %v302_v25, %v280_v26  ;;  %v1400_v28 = vrot.slane %v437_v21, %v1299_v10 }
  0xd1   : > { %v309_v41 = vsel %vm308_vm2, %v305_v32, %v307_v31  ;;  %v310_v42 = vsel %vm308_vm2, %v307_v31, %v305_v32 }
  0xd2   : > { %817 = vmatprep.subr.bf16.mxu0 %v816_v33  ;;  %v324_v51 = vmul.f32 %v1330_v36, %v310_v42  ;;  %v325_v52 = vmul.f32 %v1333_v37, %v309_v41  ;;  %v1407_v33 = vrot.slane %v437_v21, %v1297_v9  ;;  %v451_v9 = vld [vmem:[%s1544_s1] sm:$0xff] }
  0xd3   : > { %819 = vmatpush1.bf16.msra.mxu0 %v818_v34 }
  0xd4   : > { %v329_v43 = vpop.permute.xlu1 %328  ;;  %v327_v44 = vpop.permute.xlu0 %326 }
  0xd5   : > { %v331_v47 = vsel %vm330_vm3, %v327_v44, %v329_v43  ;;  %v332_v48 = vsel %vm330_vm3, %v329_v43, %v327_v44 }
  0xd6   : > { %v346_v53 = vmul.f32 %v1336_v38, %v332_v48  ;;  %v347_v54 = vmul.f32 %v1339_v39, %v331_v47 }
  0xd8   : > { %v366_v55 = vpop.permute.xlu1 %365  ;;  %v364_v56 = vpop.permute.xlu0 %363  ;;  %v820_v57 = vpack.c.bf16 %v347_v54, %v325_v52  ;;  %v822_v58 = vpack.c.bf16 %v346_v53, %v324_v51 }
  0xd9   : > { %v368_v61 = vsel %vm367_vm4, %v364_v56, %v366_v55  ;;  %v369_v62 = vsel %vm367_vm4, %v366_v55, %v364_v56 }
  0xda   : > { %v383_v63 = vmul.f32 %v1357_v49, %v368_v61  ;;  %v384_v2 = vmul.f32 %v1360_v50, %v369_v62  ;;  %821 = vmatprep.subr.bf16.mxu0 %v820_v57 }
  0xdb   : > { %823 = vmatpush1.bf16.msra.mxu0 %v822_v58 }
  0xdc   : > { %v388_v6 = vpop.permute.xlu1 %387  ;;  %v386_v7 = vpop.permute.xlu0 %385  ;;  %v824_v11 = vpack.c.bf16 %v384_v2, %v362_v59  ;;  %v826_v12 = vpack.c.bf16 %v383_v63, %v361_v60  ;;  %v1069_v59 = vmov 3   ;;  %v1070_v60 = vmov 2  }
  0xdd   : > { %v390_v22 = vsel %vm389_vm5, %v386_v7, %v388_v6  ;;  %v391_v23 = vsel %vm389_vm5, %v388_v6, %v386_v7  ;;  %923 = vset.pattern.permute.xlu0 %v1069_v59  ;;  %922 = vset.pattern.permute.xlu1 %v1070_v60 }
  0xde   : > { %825 = vmatprep.subr.bf16.mxu0 %v824_v11  ;;  %v405_v29 = vmul.f32 %v1378_v13, %v390_v22  ;;  %v406_v30 = vmul.f32 %v1381_v14, %v391_v23 }
  0xdf   : > { %827 = vmatpush1.bf16.msra.mxu0 %v826_v12 }
  0xe0   : > { %v410_v24 = vpop.permute.xlu1 %409  ;;  %v408_v25 = vpop.permute.xlu0 %407 }
  0xe1   : > { %v412_v26 = vsel %vm411_vm6, %v408_v25, %v410_v24  ;;  %v413_v27 = vsel %vm411_vm6, %v410_v24, %v408_v25 }
  0xe2   : > { %v427_v31 = vmul.f32 %v1385_v19, %v412_v26  ;;  %v428_v32 = vmul.f32 %v1388_v20, %v413_v27 }
  0xe4   : > { %v432_v34 = vpop.permute.xlu1 %431  ;;  %v430_v35 = vpop.permute.xlu0 %429  ;;  %v828_v40 = vpack.c.bf16 %v428_v32, %v406_v30  ;;  %v830_v41 = vpack.c.bf16 %v427_v31, %v405_v29 }
  0xe5   : > { %v434_v42 = vsel %vm433_vm7, %v430_v35, %v432_v34  ;;  %v435_v10 = vsel %vm433_vm7, %v432_v34, %v430_v35 }
  0xe6   : > { %v450_v43 = vmul.f32 %v1400_v28, %v435_v10  ;;  %829 = vmatprep.subr.bf16.mxu0 %v828_v40  ;;  %v449_v44 = vmul.f32 %v1407_v33, %v434_v42 }
  0xe7   : > { %831 = vmatpush1.bf16.msra.mxu0 %v830_v41 }
  0xe8   : > { %472 = vmatprep.subr.mxu0 %v450_v43 }
  0xeb   : > { %473 = vmatpush1.msra.mxu0 %v449_v44 }
  0xec   : > { %807 = vmatmul.mubr.msk.f32.vlgmr.msra.gmra.mrb[0].mxu0 %vm452_vm8, %v451_v9 }
  0xf5   : > { %v530_v47 = vpop.permute.xlu0 %529  ;;  %v536_v51 = vpop.permute.xlu1 %535 }
 0x1bf   : > { %v522_v48 = vpop.f32.mrb[0].mxu0 }
 0x1c0   : > { %v532_v52 = vmul.f32 %v530_v47, %v522_v48  ;;  %v524_v53 = vpop.f32.mrb[1].mxu0 }
 0x1c1   : > { %v533_v54 = vmul.f32 %v530_v47, %v524_v53 }
 0x1c2   : > { %v538_v55 = vadd.f32 %v536_v51, %v532_v52 }
 0x1c3   : > { %v539_v56 = vadd.f32 %v536_v51, %v533_v54 }
 0x1c4   : > { %v540_v57 = vmax.f32 %v538_v55, 0.0 }
 0x1c5   : > { %v541_v58 = vmax.f32 %v539_v56, 0.0 }
 0x1c6   : > { %542 = vrot.lane.b32.xlu1 %v540_v57, %s1059_s14 }
 0x1c7   : > { %544 = vrot.lane.b32.xlu0 %v541_v58, %s1059_s14  ;;  %s255_s14 = scalar_lea.vmem [#allocation7], %s804_s17  ;;  %s1071_s17 = smov [#allocation7]  }
 0x1ca   : > { %550 = vrot.lane.b32.xlu1 %v540_v57, %s1058_s26 }
 0x1cb   : > { %552 = vrot.lane.b32.xlu0 %v541_v58, %s1058_s26  ;;  %s815_s26 = sshll.u32 %s1123_s22, 8  ;;  %s702_s22 = scalar_lea.sflag [#allocation4], %s1238_s16 }
 0x1ce   : > { %558 = vrot.lane.b32.xlu1 %v540_v57, %s1060_s24 }
 0x1cf   : > { %560 = vrot.lane.b32.xlu0 %v541_v58, %s1060_s24  ;;  %s716_s24 = sshll.u32 %s255_s14, 4  ;;  %s1501_s24 = int_to_ptr.vmem [resolvable:$true] %s716_s24 }
 0x1d2   : > { %566 = vrot.lane.b32.xlu1 %v540_v57, %s1061_s6 }
 0x1d3   : > { %568 = vrot.lane.b32.xlu0 %v541_v58, %s1061_s6 }
 0x1d6   : > { %576 = vrot.lane.b32.xlu1 %v540_v57, %s1062_s7 }
 0x1d7   : > { %578 = vrot.lane.b32.xlu0 %v541_v58, %s1062_s7 }
 0x1da   : > { %584 = vrot.lane.b32.xlu1 %v540_v57, %s1063_s15 }
 0x1db   : > { %586 = vrot.lane.b32.xlu0 %v541_v58, %s1063_s15  ;;  %s1499_s15 = scalar_lea.hbm %s1548_s5, %s815_s26 }
 0x1de   : > { %592 = vrot.lane.b32.xlu1 %v540_v57, %s1067_s11 }
 0x1df   : > { %594 = vrot.lane.b32.xlu0 %v541_v58, %s1067_s11  ;;  %s982_s11 = scalar_lea.vmem %s1501_s24, 256 }
 0x1e0   : > { %p983_p4 = scmp.ne.s32.totalorder %s1501_s24, %s982_s11 }
 0x1e2   : > { %600 = vrot.lane.b32.xlu1 %v540_v57, %s1068_s12  ;;  %p984_p6 = pnand %p983_p4, %p1193_p12 }
 0x1e3   : > { %602 = vrot.lane.b32.xlu0 %v541_v58, %s1068_s12  ;;  %s986_s12 = sshll.u32 %s1071_s17, 4  ;;  %s987_s12 = int_to_ptr.vmem [resolvable:$false] %s986_s12 }
 0x1e4   : > { %p985_p8 = pneg %p984_p6  ;;  %s988_s10 = scalar_lea.vmem %s987_s12, 512 }
 0x1e5   : > { %p989_p10 = scmp.lt.s32.totalorder %s1501_s24, %s987_s12  ;;  %p990_p13 = scmp.lt.s32.totalorder %s988_s10, %s982_s11 }
 0x1e6   : > { %684 = vperm.xlu1 %922, %v1291_v5  }
 0x1e7   : > { %690 = vperm.xlu0 %923, %v1291_v5   ;;  %p991_p3 = por %p990_p13, %p989_p10 }
 0x1e9   : > { %p992_p7 = pnand %p991_p3, %p985_p8 }
 0x238   : > { %v543_v61 = vpop.permute.xlu1 %542 }
 0x239   : > { %v545_v62 = vpop.permute.xlu0 %544 }
 0x23a   : > { %v546_v63 = vsel %vm265_vm1, %v543_v61, %v545_v62  ;;  %v547_v2 = vsel %vm265_vm1, %v545_v62, %v543_v61 }
 0x23b   : > { %v548_v11 = vmul.f32 %v547_v2, %v1307_v16  ;;  %v549_v12 = vmul.f32 %v546_v63, %v1310_v17 }
 0x23c   : > { %v551_v3 = vpop.permute.xlu1 %550 }
 0x23d   : > { %v553_v4 = vpop.permute.xlu0 %552 }
 0x23e   : > { %v554_v6 = vsel %vm286_vm0, %v551_v3, %v553_v4  ;;  %v555_v7 = vsel %vm286_vm0, %v553_v4, %v551_v3 }
 0x23f   : > { %v556_v5 = vmul.f32 %v555_v7, %v1304_v15  ;;  %v557_v21 = vmul.f32 %v554_v6, %v1313_v18 }
 0x240   : > { %v559_v22 = vpop.permute.xlu1 %558 }
 0x241   : > { %v561_v23 = vpop.permute.xlu0 %560  ;;  %v832_v24 = vpack.c.bf16 %v557_v21, %v549_v12  ;;  %v834_v25 = vpack.c.bf16 %v556_v5, %v548_v11 }
 0x242   : > { %v562_v26 = vsel %vm308_vm2, %v559_v22, %v561_v23  ;;  %v563_v27 = vsel %vm308_vm2, %v561_v23, %v559_v22 }
 0x243   : > { %833 = vmatprep.subr.bf16.mxu1 %v832_v24  ;;  %v564_v18 = vmul.f32 %v563_v27, %v1330_v36  ;;  %v565_v30 = vmul.f32 %v562_v26, %v1333_v37  ;;  %v575_v37 = vmul.f32 %v541_v58, %v1347_v45 }
 0x244   : > { %v567_v29 = vpop.permute.xlu1 %566  ;;  %835 = vmatpush1.bf16.msra.mxu1 %v834_v25 }
 0x245   : > { %v569_v16 = vpop.permute.xlu0 %568 }
 0x246   : > { %v570_v15 = vsel %vm330_vm3, %v567_v29, %v569_v16  ;;  %v571_v17 = vsel %vm330_vm3, %v569_v16, %v567_v29 }
 0x247   : > { %v572_v31 = vmul.f32 %v571_v17, %v1336_v38  ;;  %v573_v32 = vmul.f32 %v570_v15, %v1339_v39  ;;  %v574_v38 = vmul.f32 %v540_v57, %v1350_v46 }
 0x248   : > { %v577_v34 = vpop.permute.xlu1 %576 }
 0x249   : > { %v579_v35 = vpop.permute.xlu0 %578  ;;  %v836_v40 = vpack.c.bf16 %v573_v32, %v565_v30  ;;  %v838_v41 = vpack.c.bf16 %v572_v31, %v564_v18 }
 0x24a   : > { %v580_v42 = vsel %vm367_vm4, %v577_v34, %v579_v35  ;;  %v581_v10 = vsel %vm367_vm4, %v579_v35, %v577_v34 }
 0x24b   : > { %v582_v43 = vmul.f32 %v580_v42, %v1357_v49  ;;  %v583_v36 = vmul.f32 %v581_v10, %v1360_v50  ;;  %837 = vmatprep.subr.bf16.mxu1 %v836_v40 }
 0x24c   : > { %v585_v39 = vpop.permute.xlu1 %584  ;;  %839 = vmatpush1.bf16.msra.mxu1 %v838_v41 }
 0x24d   : > { %v587_v44 = vpop.permute.xlu0 %586  ;;  %v840_v9 = vpack.c.bf16 %v583_v36, %v575_v37  ;;  %v842_v47 = vpack.c.bf16 %v582_v43, %v574_v38 }
 0x24e   : > { %v588_v48 = vsel %vm389_vm5, %v585_v39, %v587_v44  ;;  %v589_v51 = vsel %vm389_vm5, %v587_v44, %v585_v39 }
 0x24f   : > { %841 = vmatprep.subr.bf16.mxu1 %v840_v9  ;;  %v590_v52 = vmul.f32 %v588_v48, %v1378_v13  ;;  %v591_v53 = vmul.f32 %v589_v51, %v1381_v14  ;;  %v608_v14 = vld [vmem:[%s1545_s2] sm:$0xff] }
 0x250   : > { %v593_v49 = vpop.permute.xlu1 %592  ;;  %843 = vmatpush1.bf16.msra.mxu1 %v842_v47 }
 0x251   : > { %v595_v50 = vpop.permute.xlu0 %594 }
 0x252   : > { %v596_v45 = vsel %vm411_vm6, %v593_v49, %v595_v50  ;;  %v597_v46 = vsel %vm411_vm6, %v595_v50, %v593_v49 }
 0x253   : > { %v598_v54 = vmul.f32 %v596_v45, %v1385_v19  ;;  %v599_v55 = vmul.f32 %v597_v46, %v1388_v20 }
 0x254   : > { %v601_v56 = vpop.permute.xlu1 %600 }
 0x255   : > { %v603_v57 = vpop.permute.xlu0 %602  ;;  %v844_v58 = vpack.c.bf16 %v599_v55, %v591_v53  ;;  %v846_v59 = vpack.c.bf16 %v598_v54, %v590_v52 }
 0x256   : > { %v605_v60 = vsel %vm433_vm7, %v603_v57, %v601_v56  ;;  %v604_v61 = vsel %vm433_vm7, %v601_v56, %v603_v57 }
 0x257   : > { %v607_v62 = vmul.f32 %v605_v60, %v1400_v28  ;;  %845 = vmatprep.subr.bf16.mxu1 %v844_v58  ;;  %v606_v13 = vmul.f32 %v604_v61, %v1407_v33 }
 0x258   : > { %847 = vmatpush1.bf16.msra.mxu1 %v846_v59 }
 0x259   : > { %628 = vmatprep.subr.mxu1 %v607_v62 }
 0x25c   : > { %629 = vmatpush1.msra.mxu1 %v606_v13 }
 0x25d   : > { %808 = vmatmul.mubr.msk.f32.vlgmr.msra.gmra.mrb[0].mxu1 %vm452_vm8, %v608_v14 }
 0x265   : > { %v685_v19 = vpop.permute.xlu1 %684 }
 0x266   : > { %v691_v8 = vpop.permute.xlu0 %690 }
 0x330   : > { %v678_v20 = vpop.f32.mrb[0].mxu1 }
 0x331   : > { %v687_v63 = vmul.f32 %v685_v19, %v678_v20  ;;  %v680_v28 = vpop.f32.mrb[1].mxu1 }
 0x332   : > { %v688_v2 = vmul.f32 %v685_v19, %v680_v28 }
 0x333   : > { %v693_v3 = vadd.f32 %v691_v8, %v687_v63 }
 0x334   : > { %v694_v4 = vadd.f32 %v691_v8, %v688_v2 }
 0x335   : > { %v695_v6 = vadd.f32 %v693_v3, %v1252_v0 }
 0x336   : > { %v696_v33 = vadd.f32 %v694_v4, %v1258_v1 }
 0x337   : > { %v697_v7 = vmax.f32 %v695_v6, 0.0 }
 0x338   : > { %v698_v11 = vmax.f32 %v696_v33, 0.0 }
 0x339   : > { %699 = vst [vmem:[%s255_s14] sm:$0xff] %v697_v7 }
 0x33a   : > { %700 = vst [vmem:[%s255_s14 + $0x8] sm:$0xff] %v698_v11 }
 0x33b   : > { %995 = shalt.err (!%p992_p7)
}
 0x33c   : > { %s996_s16 = scalar_lea.hbm %s1499_s15, 256  ;;  %s1000_s28 = scalar_lea.hbm %s1548_s5, 512 }
 0x33d   : > { %p997_p9 = scmp.ne.s32.totalorder %s1499_s15, %s996_s16  ;;  %p1001_p0 = scmp.lt.u32.totalorder %s1499_s15, %s1548_s5 }
 0x33e   : > { %p1002_p11 = scmp.lt.u32.totalorder %s1000_s28, %s996_s16  ;;  %p1004_p4 = scmp.lt.u32.totalorder %s996_s16, %s1499_s15 }
 0x33f   : > { %p998_p2 = pnand %p997_p9, %p1193_p12 }
 0x340   : > { %p1003_p1 = por %p1002_p11, %p1001_p0 }
 0x341   : > { %p999_p5 = pneg %p998_p2 }
 0x342   : > { %p1005_p6 = por %p1004_p4, %p1003_p1 }
 0x344   : > { %p1006_p8 = pnand %p1005_p6, %p999_p5 }
 0x346   : > { %1009 = shalt.err (!%p1006_p8)
}
 0x347   : > { %854 = dma.vmem_to_hbm [thread:$0]  (%p1193_p12), %s1501_s24, 256, %s1499_s15, %s702_s22  }
 0x348 PF: > { %s728_s26 = sand.u32 1, %s1040_s18   ;;  %p1563_p10 = scmp.ne.s32.totalorder %s1553_s25, 0 }
 0x349   : > { %p1564_p13 = scmp.ge.s32.totalorder %s1052_s21, 2  ;;  %s729_s14 = scalar_lea.sflag [#allocation4], %s728_s26 }
 0x34b   : > { %p865_p3 = pnand %p1564_p13, %p1563_p10 }
 0x34d   : > { %1035 = dma.done.wait (!%p865_p3), %s729_s14, 256  }
 0x34e   : > { %1037 = vsyncadd (!%p865_p3), %s729_s14, 4294967040  ;;  %p19_p7 = scmp.ge.s32.totalorder %s1158_s30, 4   ;;  %s1565_s18 = smov %s1044_s19 }
 0x34f   : > { %s1566_s19 = smov %s1048_s20  ;;  %s1567_s20 = smov %s1189_s8 }
 0x350   : > { %s1568_s21 = smov %s1158_s30  ;;  %21 = sbr.rel (!%p19_p7) target bundleno = 6 (0x6), region = 97 }
 0x357   :  { %734 = vsyncpa [#allocation3], 1 }
 0x358   :  { %736 = vsyncpa [#allocation3 + $0x1], 1 }
 0x359   :  { %737 = vsyncpa [#allocation6], 1 }
 0x35a   :  { %738 = vsyncpa [#allocation4], 1 }
 0x35b   :  { %740 = vsyncpa [#allocation4 + $0x1], 1 }

</bundles_post_ra>
